<compile_context>
chip_gen: v5e
topology: v5e:2x2
jax: 0.10.0
libtpu: 0.0.40
codegen_flags: <defaults>
</compile_context>

<pallas_src>
import functools

import jax
import jax.numpy as jnp
from jax.experimental import pallas as pl
from jax.experimental.pallas import tpu as pltpu


def _round_up(n, m):
    return ((n + m - 1) // m) * m


def _silu(x, bf16_eup):
    # silu(x) = x * sigmoid(x).  On v6e/v7x evaluate the sigmoid on a bf16
    # input (packed-bf16 EUP, ~2x transcendental throughput); multiply & result
    # stay f32.  v5e has no bf16 EUP, keep everything f32 there.
    xs = x.astype(jnp.bfloat16) if bf16_eup else x.astype(jnp.float32)
    return x.astype(jnp.float32) * jax.nn.sigmoid(xs).astype(jnp.float32)


def _vmem_limit_bytes(default=48 * 1024 * 1024):
    """Generation-aware VMEM limit: ~3/4 of per-core VMEM capacity, clamped."""
    try:
        cap = pltpu.get_tpu_info().vmem_capacity_bytes
    except Exception:
        return default
    return int(min(max(cap * 3 // 4, 32 * 1024 * 1024), 100 * 1024 * 1024))


def _has_bf16_eup():
    """bf16 transcendentals exist on v6e / v7x but not on v5e (or older)."""
    try:
        kind = jax.devices()[0].device_kind.lower()
    except Exception:
        return False
    return any(tag in kind for tag in ("v6", "v7"))


def f2net_head_kernel(x_ref, wqog_w_ref, wqog_b_ref, conv_w_ref, conv_b_ref,
                      wa_w_ref, wout_w_ref, wout_b_ref, out_ref,
                      *, d_conv, scan_chunk, bf16_eup):
    x = x_ref[0]                                   # (S, dm_p) bf16
    S = x.shape[0]
    d_p = out_ref.shape[-1]

    # ---- fused Q|O|G projection: one N=3*d_p bf16 matmul, f32 accumulation --
    qog = (jnp.dot(x, wqog_w_ref[...], preferred_element_type=jnp.float32)
           + wqog_b_ref[...])                      # (S, 3*d_p) f32
    Q = qog[:, :d_p]                               # f32 (feeds conv + global sum)
    O = qog[:, d_p:2 * d_p].astype(jnp.bfloat16)   # first use: P = O * glob
    G = qog[:, 2 * d_p:3 * d_p].astype(jnp.bfloat16)   # first use: silu(G)

    # ---- conv1d over the sequence: all taps fused into one K=d_conv*d_p matmul
    pad = d_conv // 2
    row = jax.lax.broadcasted_iota(jnp.int32, (S, d_p), 0)
    taps = []
    for k in range(d_conv):
        s = pad - k                                # static per-tap sequence shift
        if s == 0:
            y = Q
        else:
            y = pltpu.roll(Q, s % S, axis=0)                       # XLU rotate
            y = jnp.where((row >= s) & (row < S + s), y, 0.0)      # zero-pad edges
        taps.append(y.astype(jnp.bfloat16))
    q_taps = jnp.concatenate(taps, axis=1)         # (S, d_conv*d_p) bf16, 128-aligned
    cq = (jnp.dot(q_taps, conv_w_ref[...], preferred_element_type=jnp.float32)
          + conv_b_ref[...])
    cq = _silu(cq, bf16_eup)

    # ---- summ(): softmax over the sequence axis (scale pre-folded into wa_w) -
    a = jnp.dot(cq.astype(jnp.bfloat16), wa_w_ref[...],
                preferred_element_type=jnp.float32)
    a_max = jnp.max(a, axis=0, keepdims=True)
    ea = jnp.exp(a - a_max)
    # approx reciprocal (EUP slot): softmax columns sum to 1 +/- ~2^-12.
    inv_den = pl.reciprocal(jnp.sum(ea, axis=0, keepdims=True), approx=True)
    sm = ea * inv_den
    glob = jnp.sum(Q * sm, axis=0, keepdims=True)  # (1, d_p) f32

    P = O * glob                                   # f32 via promotion

    # ---- inclusive cumsum over the sequence: blocked MXU scan ----------------
    # Per T-row chunk: cumsum = tri(T,T) @ chunk (bf16 in, f32 accumulate) on
    # the otherwise idle MXU; carry between chunks is one (1, d_p) f32 row.
    T = min(S, scan_chunk)
    r_t = jax.lax.broadcasted_iota(jnp.int32, (T, T), 0)
    c_t = jax.lax.broadcasted_iota(jnp.int32, (T, T), 1)
    tri = (r_t >= c_t).astype(jnp.bfloat16)        # lower-triangular ones
    Pb = P.astype(jnp.bfloat16)

    carry = jnp.zeros((1, d_p), jnp.float32)
    pieces = []
    for lo in range(0, S, T):
        hi = min(S, lo + T)
        tc = hi - lo
        local = jnp.dot(tri[:tc, :tc], Pb[lo:hi],
                        preferred_element_type=jnp.float32) + carry
        pieces.append(local)
        if hi < S:
            carry = local[tc - 1:tc, :]            # running prefix for next chunk
    cum = pieces[0] if len(pieces) == 1 else jnp.concatenate(pieces, axis=0)

    L = _silu(G, bf16_eup) * cum
    R = (jnp.dot(L.astype(jnp.bfloat16), wout_w_ref[...],
                 preferred_element_type=jnp.float32) + wout_b_ref[...])
    out_ref[0] = R.astype(out_ref.dtype)


def f2net_head_forward(x, kparams, *, d, d_conv, out_dtype=jnp.bfloat16,
                       scan_chunk=256):
    assert d_conv % 2 == 1, \
        "PyTorch Conv1d(padding=d_conv//2) is shape-consistent only for odd d_conv"
    B, S, d_model = x.shape
    dm_p = kparams["wqog_w"].shape[0]
    d_p = kparams["wout_w"].shape[1]

    # Lane-dense padding of the channel dim; padded columns stay exactly zero.
    xp = jnp.pad(x, ((0, 0), (0, 0), (0, dm_p - d_model))).astype(jnp.bfloat16)

    kernel = functools.partial(f2net_head_kernel, d_conv=d_conv,
                               scan_chunk=scan_chunk, bf16_eup=_has_bf16_eup())
    out = pl.pallas_call(
        kernel,
        out_shape=jax.ShapeDtypeStruct((B, S, d_p), out_dtype),
        grid=(B,),
        in_specs=[
            pl.BlockSpec((1, S, dm_p), lambda b: (b, 0, 0)),       # x
            pl.BlockSpec((dm_p, 3 * d_p), lambda b: (0, 0)),       # Wq|Wo|Wg fused (bf16)
            pl.BlockSpec((1, 3 * d_p), lambda b: (0, 0)),          # fused q/o/g biases (f32)
            pl.BlockSpec((d_conv * d_p, d_p), lambda b: (0, 0)),   # conv weight, tap-stacked (bf16)
            pl.BlockSpec((1, d_p), lambda b: (0, 0)),              # conv bias
            pl.BlockSpec((d_p, d_p), lambda b: (0, 0)),            # w_a (softmax scale folded in)
            pl.BlockSpec((d_p, d_p), lambda b: (0, 0)),            # Wout weight
            pl.BlockSpec((1, d_p), lambda b: (0, 0)),              # Wout bias
        ],
        out_specs=pl.BlockSpec((1, S, d_p), lambda b: (b, 0, 0)),
        compiler_params=pltpu.CompilerParams(
            dimension_semantics=("parallel",),
            vmem_limit_bytes=_vmem_limit_bytes(),
        ),
    )(xp, kparams["wqog_w"], kparams["wqog_b"], kparams["conv_w"],
      kparams["conv_b"], kparams["wa_w"], kparams["wout_w"], kparams["wout_b"])

    return out[:, :, :d]


def init_params(key, d_model, d, d_conv):
    """Unpadded f32 parameters (kernel-friendly orientation: y = x @ W + b)."""
    ks = jax.random.split(key, 11)
    sc = 0.05
    scale = 1.0 / float(d) ** 0.5
    return {
        "wq_w": sc * jax.random.normal(ks[0], (d_model, d), jnp.float32),
        "wo_w": sc * jax.random.normal(ks[1], (d_model, d), jnp.float32),
        "wg_w": sc * jax.random.normal(ks[2], (d_model, d), jnp.float32),
        "wq_b": sc * jax.random.normal(ks[3], (d,), jnp.float32),
        "wo_b": sc * jax.random.normal(ks[4], (d,), jnp.float32),
        "wg_b": sc * jax.random.normal(ks[5], (d,), jnp.float32),
        # PyTorch Conv1d weight (out, in, k) stored here as (k, in, out).
        "conv_w": sc * jax.random.normal(ks[6], (d_conv, d, d), jnp.float32),
        "conv_b": sc * jax.random.normal(ks[7], (d,), jnp.float32),
        # softmax scale (1/sqrt(d)) folded into w_a (exact, it's linear).
        "wa_w": (sc * jax.random.normal(ks[8], (d, d), jnp.float32)) * scale,
        "wout_w": sc * jax.random.normal(ks[9], (d, d), jnp.float32),
        "wout_b": sc * jax.random.normal(ks[10], (d,), jnp.float32),
    }


def pack_params(params, d_model, d, d_conv, *, lane=128):
    """Pad channel dims to lane multiples, fuse Q/O/G + conv taps, cast to bf16."""
    dm_p = _round_up(d_model, lane)
    d_p = _round_up(d, lane)

    def pad_w(w, rows, cols):
        return jnp.pad(w, ((0, rows - w.shape[0]), (0, cols - w.shape[1])))

    def pad_b(b):
        return jnp.pad(b, (0, d_p - b.shape[0])).reshape(1, d_p)

    wqog_w = jnp.concatenate(
        [pad_w(params["wq_w"], dm_p, d_p),
         pad_w(params["wo_w"], dm_p, d_p),
         pad_w(params["wg_w"], dm_p, d_p)], axis=1).astype(jnp.bfloat16)
    wqog_b = jnp.concatenate(
        [pad_b(params["wq_b"]), pad_b(params["wo_b"]), pad_b(params["wg_b"])],
        axis=1)
    conv_w = jnp.pad(params["conv_w"], ((0, 0), (0, d_p - d), (0, d_p - d)))
    conv_w = conv_w.reshape(d_conv * d_p, d_p).astype(jnp.bfloat16)
    return {
        "wqog_w": wqog_w,                               # (dm_p, 3*d_p) bf16
        "wqog_b": wqog_b,                               # (1, 3*d_p)  f32
        "conv_w": conv_w,                               # (d_conv*d_p, d_p) bf16
        "conv_b": pad_b(params["conv_b"]),              # (1, d_p) f32
        "wa_w": pad_w(params["wa_w"], d_p, d_p).astype(jnp.bfloat16),
        "wout_w": pad_w(params["wout_w"], d_p, d_p).astype(jnp.bfloat16),
        "wout_b": pad_b(params["wout_b"]),
    }


def reference_forward(x, params, *, d, d_conv):
    """Pure-JAX f32 reference mirroring the PyTorch module semantics."""
    Q = x @ params["wq_w"] + params["wq_b"]
    O = x @ params["wo_w"] + params["wo_b"]
    G = x @ params["wg_w"] + params["wg_b"]
    S = x.shape[1]
    pad = d_conv // 2
    Qpad = jnp.pad(Q, ((0, 0), (pad, pad), (0, 0)))
    cq = sum(Qpad[:, k:k + S, :] @ params["conv_w"][k] for k in range(d_conv))
    cq = cq + params["conv_b"]
    cq = cq * jax.nn.sigmoid(cq)
    a = cq @ params["wa_w"]                 # scale already folded into wa_w
    sm = jax.nn.softmax(a, axis=-2)
    glob = jnp.sum(Q * sm, axis=-2, keepdims=True)
    P = O * glob
    L = (G * jax.nn.sigmoid(G)) * jnp.cumsum(P, axis=-2)
    return L @ params["wout_w"] + params["wout_b"]


if __name__ == "__main__":
    configs = [
        # (B, S, d_model, d, d_conv, scan_chunk)
        (2, 8, 32, 32, 3, 256),
        # Non-power-of-two S, wider conv, d != d_model, and a deliberately tiny
        # scan chunk so the blocked-scan carry path is exercised at small shapes.
        (2, 24, 32, 48, 5, 8),
    ]
    key = jax.random.PRNGKey(0)
    for ci, (B, S, d_model, d, d_conv, scan_chunk) in enumerate(configs):
        kx, kp, key = jax.random.split(key, 3)
        x = jax.random.normal(kx, (B, S, d_model), jnp.float32)

        params = init_params(kp, d_model, d, d_conv)
        kparams = pack_params(params, d_model, d, d_conv)

        out = f2net_head_forward(x, kparams, d=d, d_conv=d_conv,
                                 scan_chunk=scan_chunk)
        out = jax.block_until_ready(out)
        assert out.shape == (B, S, d)

        ref = reference_forward(x, params, d=d, d_conv=d_conv)
        out_f32 = jnp.asarray(out, jnp.float32)
        max_err = float(jnp.max(jnp.abs(out_f32 - ref)))
        # bf16 MXU operands + bf16 output -> slightly looser than a pure-f32 check.
        assert jnp.allclose(out_f32, ref, atol=1e-2, rtol=1e-2), (
            f"config {ci}: mismatch vs JAX reference (max abs err={max_err})")

    print("KERNEL_OK")
</pallas_src>

<mosaic_0001>
module attributes {stable_mosaic.version = 11 : i64} {
  func.func @f2net_head_kernel(%arg0: i32, %arg1: memref<1x8x128xbf16, #tpu.memory_space<vmem>>, %arg2: memref<128x384xbf16, #tpu.memory_space<vmem>>, %arg3: memref<1x384xf32, #tpu.memory_space<vmem>>, %arg4: memref<384x128xbf16, #tpu.memory_space<vmem>>, %arg5: memref<1x128xf32, #tpu.memory_space<vmem>>, %arg6: memref<128x128xbf16, #tpu.memory_space<vmem>>, %arg7: memref<128x128xbf16, #tpu.memory_space<vmem>>, %arg8: memref<1x128xf32, #tpu.memory_space<vmem>>, %arg9: memref<1x8x128xbf16, #tpu.memory_space<vmem>>) attributes {dimension_semantics = [#tpu.dimension_semantics<parallel>], iteration_bounds = array<i64: 2>, scalar_prefetch = 0 : i64, scratch_operands = 0 : i64, tpu.core_type = #tpu.core_type<tc>, window_params = [{transform_indices = @transform_0, window_bounds = array<i64: 1, 8, 128>}, {pipeline_mode = #tpu.pipeline_mode<synchronous>, transform_indices = @transform_1, window_bounds = array<i64: 128, 384>}, {pipeline_mode = #tpu.pipeline_mode<synchronous>, transform_indices = @transform_2, window_bounds = array<i64: 1, 384>}, {pipeline_mode = #tpu.pipeline_mode<synchronous>, transform_indices = @transform_3, window_bounds = array<i64: 384, 128>}, {pipeline_mode = #tpu.pipeline_mode<synchronous>, transform_indices = @transform_4, window_bounds = array<i64: 1, 128>}, {pipeline_mode = #tpu.pipeline_mode<synchronous>, transform_indices = @transform_5, window_bounds = array<i64: 128, 128>}, {pipeline_mode = #tpu.pipeline_mode<synchronous>, transform_indices = @transform_6, window_bounds = array<i64: 128, 128>}, {pipeline_mode = #tpu.pipeline_mode<synchronous>, transform_indices = @transform_7, window_bounds = array<i64: 1, 128>}, {transform_indices = @transform_8, window_bounds = array<i64: 1, 8, 128>}]} {
    %c0 = arith.constant 0 : index
    %c0_0 = arith.constant 0 : index
    %c0_1 = arith.constant 0 : index
    %0 = vector.load %arg1[%c0, %c0_0, %c0_1] : memref<1x8x128xbf16, #tpu.memory_space<vmem>>, vector<1x8x128xbf16>
    %1 = vector.shape_cast %0 : vector<1x8x128xbf16> to vector<8x128xbf16>
    %c0_2 = arith.constant 0 : index
    %c0_3 = arith.constant 0 : index
    %2 = vector.load %arg2[%c0_2, %c0_3] : memref<128x384xbf16, #tpu.memory_space<vmem>>, vector<128x384xbf16>
    %cst = arith.constant dense<0.000000e+00> : vector<8x384xf32>
    %3 = tpu.matmul %1, %2, %cst {dimension_numbers = #tpu.dot_dimension_numbers<[1], [0], [0], [1], [0, 0, 1, 1], [], []>} : vector<8x128xbf16>, vector<128x384xbf16>, vector<8x384xf32> -> vector<8x384xf32>
    %c0_4 = arith.constant 0 : index
    %c0_5 = arith.constant 0 : index
    %4 = vector.load %arg3[%c0_4, %c0_5] : memref<1x384xf32, #tpu.memory_space<vmem>>, vector<1x384xf32>
    %5 = vector.broadcast %4 : vector<1x384xf32> to vector<8x384xf32>
    %6 = arith.addf %3, %5 : vector<8x384xf32>
    %7 = vector.extract_strided_slice %6 {offsets = [0, 0], sizes = [8, 128], strides = [1, 1]} : vector<8x384xf32> to vector<8x128xf32>
    %8 = vector.extract_strided_slice %6 {offsets = [0, 128], sizes = [8, 128], strides = [1, 1]} : vector<8x384xf32> to vector<8x128xf32>
    %9 = arith.truncf %8 : vector<8x128xf32> to vector<8x128xbf16>
    %10 = vector.extract_strided_slice %6 {offsets = [0, 256], sizes = [8, 128], strides = [1, 1]} : vector<8x384xf32> to vector<8x128xf32>
    %11 = arith.truncf %10 : vector<8x128xf32> to vector<8x128xbf16>
    %12 = tpu.iota {dimensions = array<i32: 0>} : vector<8x128xi32>
    %c1_i32 = arith.constant 1 : i32
    %13 = tpu.dynamic_rotate %7 by %c1_i32 dim 0 : vector<8x128xf32>, i32 -> vector<8x128xf32>
    %c1_i32_6 = arith.constant 1 : i32
    %14 = vector.broadcast %c1_i32_6 : i32 to vector<8x128xi32>
    %15 = arith.cmpi sge, %12, %14 : vector<8x128xi32>
    %c9_i32 = arith.constant 9 : i32
    %16 = vector.broadcast %c9_i32 : i32 to vector<8x128xi32>
    %17 = arith.cmpi slt, %12, %16 : vector<8x128xi32>
    %18 = arith.andi %15, %17 : vector<8x128xi1>
    %cst_7 = arith.constant 0.000000e+00 : f32
    %19 = vector.broadcast %cst_7 : f32 to vector<8x128xf32>
    %20 = arith.select %18, %13, %19 : vector<8x128xi1>, vector<8x128xf32>
    %21 = arith.truncf %20 : vector<8x128xf32> to vector<8x128xbf16>
    %22 = arith.truncf %7 : vector<8x128xf32> to vector<8x128xbf16>
    %c7_i32 = arith.constant 7 : i32
    %23 = tpu.dynamic_rotate %7 by %c7_i32 dim 0 : vector<8x128xf32>, i32 -> vector<8x128xf32>
    %c-1_i32 = arith.constant -1 : i32
    %24 = vector.broadcast %c-1_i32 : i32 to vector<8x128xi32>
    %25 = arith.cmpi sge, %12, %24 : vector<8x128xi32>
    %c7_i32_8 = arith.constant 7 : i32
    %26 = vector.broadcast %c7_i32_8 : i32 to vector<8x128xi32>
    %27 = arith.cmpi slt, %12, %26 : vector<8x128xi32>
    %28 = arith.andi %25, %27 : vector<8x128xi1>
    %cst_9 = arith.constant 0.000000e+00 : f32
    %29 = vector.broadcast %cst_9 : f32 to vector<8x128xf32>
    %30 = arith.select %28, %23, %29 : vector<8x128xi1>, vector<8x128xf32>
    %31 = arith.truncf %30 : vector<8x128xf32> to vector<8x128xbf16>
    %32 = tpu.concatenate %21, %22, %31 in 1 : vector<8x128xbf16>, vector<8x128xbf16>, vector<8x128xbf16> -> vector<8x384xbf16>
    %c0_10 = arith.constant 0 : index
    %c0_11 = arith.constant 0 : index
    %33 = vector.load %arg4[%c0_10, %c0_11] : memref<384x128xbf16, #tpu.memory_space<vmem>>, vector<384x128xbf16>
    %cst_12 = arith.constant dense<0.000000e+00> : vector<8x128xf32>
    %34 = tpu.matmul %32, %33, %cst_12 {dimension_numbers = #tpu.dot_dimension_numbers<[1], [0], [0], [1], [0, 0, 1, 1], [], []>} : vector<8x384xbf16>, vector<384x128xbf16>, vector<8x128xf32> -> vector<8x128xf32>
    %c0_13 = arith.constant 0 : index
    %c0_14 = arith.constant 0 : index
    %35 = vector.load %arg5[%c0_13, %c0_14] : memref<1x128xf32, #tpu.memory_space<vmem>>, vector<1x128xf32>
    %36 = vector.broadcast %35 : vector<1x128xf32> to vector<8x128xf32>
    %37 = arith.addf %34, %36 : vector<8x128xf32>
    %38 = arith.negf %37 : vector<8x128xf32>
    %39 = math.exp %38 : vector<8x128xf32>
    %cst_15 = arith.constant 1.000000e+00 : f32
    %40 = vector.broadcast %cst_15 : f32 to vector<8x128xf32>
    %41 = arith.addf %40, %39 : vector<8x128xf32>
    %42 = arith.divf %40, %41 : vector<8x128xf32>
    %43 = arith.mulf %37, %42 : vector<8x128xf32>
    %44 = arith.truncf %43 : vector<8x128xf32> to vector<8x128xbf16>
    %c0_16 = arith.constant 0 : index
    %c0_17 = arith.constant 0 : index
    %45 = vector.load %arg6[%c0_16, %c0_17] : memref<128x128xbf16, #tpu.memory_space<vmem>>, vector<128x128xbf16>
    %cst_18 = arith.constant dense<0.000000e+00> : vector<8x128xf32>
    %46 = tpu.matmul %44, %45, %cst_18 {dimension_numbers = #tpu.dot_dimension_numbers<[1], [0], [0], [1], [0, 0, 1, 1], [], []>} : vector<8x128xbf16>, vector<128x128xbf16>, vector<8x128xf32> -> vector<8x128xf32>
    %cst_19 = arith.constant dense<0xFF800000> : vector<128xf32>
    %47 = vector.multi_reduction <maximumf>, %46, %cst_19 [0] : vector<8x128xf32> to vector<128xf32>
    %48 = vector.shape_cast %47 : vector<128xf32> to vector<1x128xf32>
    %49 = vector.broadcast %48 : vector<1x128xf32> to vector<8x128xf32>
    %50 = arith.subf %46, %49 : vector<8x128xf32>
    %51 = math.exp %50 : vector<8x128xf32>
    %cst_20 = arith.constant dense<0.000000e+00> : vector<128xf32>
    %52 = vector.multi_reduction <add>, %51, %cst_20 [0] : vector<8x128xf32> to vector<128xf32>
    %53 = vector.shape_cast %52 : vector<128xf32> to vector<1x128xf32>
    %54 = tpu.reciprocal %53 {approx = true} : vector<1x128xf32> -> vector<1x128xf32>
    %55 = vector.broadcast %54 : vector<1x128xf32> to vector<8x128xf32>
    %56 = arith.mulf %51, %55 : vector<8x128xf32>
    %57 = arith.mulf %7, %56 : vector<8x128xf32>
    %cst_21 = arith.constant dense<0.000000e+00> : vector<128xf32>
    %58 = vector.multi_reduction <add>, %57, %cst_21 [0] : vector<8x128xf32> to vector<128xf32>
    %59 = vector.shape_cast %58 : vector<128xf32> to vector<1x128xf32>
    %60 = arith.extf %9 : vector<8x128xbf16> to vector<8x128xf32>
    %61 = vector.broadcast %59 : vector<1x128xf32> to vector<8x128xf32>
    %62 = arith.mulf %60, %61 : vector<8x128xf32>
    %63 = tpu.iota {dimensions = array<i32: 0>} : vector<8x8xi32>
    %64 = tpu.iota {dimensions = array<i32: 1>} : vector<8x8xi32>
    %65 = arith.cmpi sge, %63, %64 : vector<8x8xi32>
    %66 = arith.extui %65 : vector<8x8xi1> to vector<8x8xi32>
    %67 = arith.sitofp %66 : vector<8x8xi32> to vector<8x8xf32>
    %68 = arith.truncf %67 : vector<8x8xf32> to vector<8x8xbf16>
    %69 = arith.truncf %62 : vector<8x128xf32> to vector<8x128xbf16>
    %cst_22 = arith.constant 0.000000e+00 : f32
    %70 = vector.broadcast %cst_22 : f32 to vector<1x128xf32>
    %cst_23 = arith.constant dense<0.000000e+00> : vector<8x128xf32>
    %71 = tpu.matmul %68, %69, %cst_23 {dimension_numbers = #tpu.dot_dimension_numbers<[1], [0], [0], [1], [0, 0, 1, 1], [], []>} : vector<8x8xbf16>, vector<8x128xbf16>, vector<8x128xf32> -> vector<8x128xf32>
    %72 = vector.broadcast %70 : vector<1x128xf32> to vector<8x128xf32>
    %73 = arith.addf %71, %72 : vector<8x128xf32>
    %74 = arith.extf %11 : vector<8x128xbf16> to vector<8x128xf32>
    %75 = arith.extf %11 : vector<8x128xbf16> to vector<8x128xf32>
    %76 = arith.negf %74 : vector<8x128xf32>
    %77 = math.exp %76 : vector<8x128xf32>
    %cst_24 = arith.constant 1.000000e+00 : f32
    %78 = vector.broadcast %cst_24 : f32 to vector<8x128xf32>
    %79 = arith.addf %78, %77 : vector<8x128xf32>
    %80 = arith.divf %78, %79 : vector<8x128xf32>
    %81 = arith.mulf %75, %80 : vector<8x128xf32>
    %82 = arith.mulf %81, %73 : vector<8x128xf32>
    %83 = arith.truncf %82 : vector<8x128xf32> to vector<8x128xbf16>
    %c0_25 = arith.constant 0 : index
    %c0_26 = arith.constant 0 : index
    %84 = vector.load %arg7[%c0_25, %c0_26] : memref<128x128xbf16, #tpu.memory_space<vmem>>, vector<128x128xbf16>
    %cst_27 = arith.constant dense<0.000000e+00> : vector<8x128xf32>
    %85 = tpu.matmul %83, %84, %cst_27 {dimension_numbers = #tpu.dot_dimension_numbers<[1], [0], [0], [1], [0, 0, 1, 1], [], []>} : vector<8x128xbf16>, vector<128x128xbf16>, vector<8x128xf32> -> vector<8x128xf32>
    %c0_28 = arith.constant 0 : index
    %c0_29 = arith.constant 0 : index
    %86 = vector.load %arg8[%c0_28, %c0_29] : memref<1x128xf32, #tpu.memory_space<vmem>>, vector<1x128xf32>
    %87 = vector.broadcast %86 : vector<1x128xf32> to vector<8x128xf32>
    %88 = arith.addf %85, %87 : vector<8x128xf32>
    %89 = arith.truncf %88 : vector<8x128xf32> to vector<8x128xbf16>
    %c0_30 = arith.constant 0 : index
    %c0_31 = arith.constant 0 : index
    %c0_32 = arith.constant 0 : index
    %90 = vector.load %arg9[%c0_30, %c0_31, %c0_32] : memref<1x8x128xbf16, #tpu.memory_space<vmem>>, vector<1x8x128xbf16>
    %91 = vector.shape_cast %90 : vector<1x8x128xbf16> to vector<8x128xbf16>
    %92 = vector.shape_cast %89 : vector<8x128xbf16> to vector<1x8x128xbf16>
    tpu.vector_store %arg9[%c0_30, %c0_31, %c0_32], %92 {strides = array<i32>} : memref<1x8x128xbf16, #tpu.memory_space<vmem>>, vector<1x8x128xbf16>,
    return
  }
  func.func @transform_0(%arg0: i32) -> (i32, i32, i32) {
    %c0_i32 = arith.constant 0 : i32
    %c0_i32_0 = arith.constant 0 : i32
    %c0_i32_1 = arith.constant 0 : i32
    return %arg0, %c0_i32, %c0_i32_0 : i32, i32, i32
  }
  func.func @transform_1(%arg0: i32) -> (i32, i32) {
    %c0_i32 = arith.constant 0 : i32
    %c0_i32_0 = arith.constant 0 : i32
    %c0_i32_1 = arith.constant 0 : i32
    return %c0_i32, %c0_i32_0 : i32, i32
  }
  func.func @transform_2(%arg0: i32) -> (i32, i32) {
    %c0_i32 = arith.constant 0 : i32
    %c0_i32_0 = arith.constant 0 : i32
    %c0_i32_1 = arith.constant 0 : i32
    return %c0_i32, %c0_i32_0 : i32, i32
  }
  func.func @transform_3(%arg0: i32) -> (i32, i32) {
    %c0_i32 = arith.constant 0 : i32
    %c0_i32_0 = arith.constant 0 : i32
    %c0_i32_1 = arith.constant 0 : i32
    return %c0_i32, %c0_i32_0 : i32, i32
  }
  func.func @transform_4(%arg0: i32) -> (i32, i32) {
    %c0_i32 = arith.constant 0 : i32
    %c0_i32_0 = arith.constant 0 : i32
    %c0_i32_1 = arith.constant 0 : i32
    return %c0_i32, %c0_i32_0 : i32, i32
  }
  func.func @transform_5(%arg0: i32) -> (i32, i32) {
    %c0_i32 = arith.constant 0 : i32
    %c0_i32_0 = arith.constant 0 : i32
    %c0_i32_1 = arith.constant 0 : i32
    return %c0_i32, %c0_i32_0 : i32, i32
  }
  func.func @transform_6(%arg0: i32) -> (i32, i32) {
    %c0_i32 = arith.constant 0 : i32
    %c0_i32_0 = arith.constant 0 : i32
    %c0_i32_1 = arith.constant 0 : i32
    return %c0_i32, %c0_i32_0 : i32, i32
  }
  func.func @transform_7(%arg0: i32) -> (i32, i32) {
    %c0_i32 = arith.constant 0 : i32
    %c0_i32_0 = arith.constant 0 : i32
    %c0_i32_1 = arith.constant 0 : i32
    return %c0_i32, %c0_i32_0 : i32, i32
  }
  func.func @transform_8(%arg0: i32) -> (i32, i32, i32) {
    %c0_i32 = arith.constant 0 : i32
    %c0_i32_0 = arith.constant 0 : i32
    %c0_i32_1 = arith.constant 0 : i32
    return %arg0, %c0_i32, %c0_i32_0 : i32, i32, i32
  }
}

</mosaic_0001>

<bundles_post_ra>
// kernel: tpu_custom_call.1
= control target key start
LH: loop header
LB: loop body
LE: loop exit
PB: predicated region body
PF: predicated region fallthrough
CT: control target
= control target key end

     0   :  { %s2253_s0 = inlined_call_operand.hbm [shape: bf16[2,8,128], index: 0, kind: input, shape index: {}]   ;;  %s2254_s1 = inlined_call_operand.hbm [shape: bf16[128,384], index: 1, kind: input, shape index: {}]   ;;  %s2255_s2 = inlined_call_operand.hbm [shape: f32[1,384], index: 2, kind: input, shape index: {}]   ;;  %s2256_s3 = inlined_call_operand.hbm [shape: bf16[384,128], index: 3, kind: input, shape index: {}]   ;;  %s2257_s4 = inlined_call_operand.vmem [shape: f32[1,128], index: 4, kind: input, shape index: {}]   ;;  %s2258_s5 = inlined_call_operand.hbm [shape: bf16[128,128], index: 5, kind: input, shape index: {}]   ;;  %s2259_s6 = inlined_call_operand.hbm [shape: bf16[128,128], index: 6, kind: input, shape index: {}]   ;;  %s2260_s7 = inlined_call_operand.vmem [shape: f32[1,128], index: 7, kind: input, shape index: {}]   ;;  %s2261_s8 = inlined_call_operand.hbm [shape: bf16[2,8,128], index: 8, kind: output, shape index: {}]  }
   0x1   :  { %2262 = sst [smem:[#allocation19_spill]] %s2254_s1 }
   0x2   :  { %2263 = sst [smem:[#allocation20_spill]] %s2255_s2 }
   0x3   :  { %13 = vsyncpa [#allocation3], 0 }
   0x4   :  { %15 = vsyncpa [#allocation3 + $0x1], 0 }
   0x5   :  { %16 = vsyncpa [#allocation6], 0 }
   0x6   :  { %17 = vsyncpa [#allocation9], 0 }
   0x7   :  { %18 = vsyncpa [#allocation12], 0 }
   0x8   :  { %19 = vsyncpa [#allocation4], 0 }
   0x9   :  { %21 = vsyncpa [#allocation4 + $0x1], 0  ;;  %s2040_s27 = smov 0   ;;  %s2042_s28 = smov 0  }
   0xa   :  { %s2044_s29 = smov 0   ;;  %s2046_s30 = smov 0  }
   0xb LB: > { %s2264_s1 = sld [smem:[#allocation19_spill]]  ;;  %s2064_s12 = sadd.s32 4294967295, %s1983_s30   ;;  %s1983_s30 = sphi %s2046_s30, %s2276_s30   ;;  %s1979_s29 = sphi %s2044_s29, %s2275_s29   ;;  %s1975_s28 = sphi %s2042_s28, %s2274_s28   ;;  %s1971_s27 = sphi %s2040_s27, %s2273_s27  }
   0xc   : > { %p1258_p0 = scmp.ge.s32.totalorder %s1983_s30, 1  ;;  %p48_p1 = scmp.eq.s32.totalorder %s2064_s12, 0 }
   0xd   : > { %p231_p2 = scmp.lt.s32.totalorder %s1983_s30, 3  ;;  %s1985_s14 = smov [#allocation5]  }
   0xe   : > { %s244_s15 = sshll.u32 %s1985_s14, 4  ;;  %s268_s18 = sshll.u32 %s2256_s3, 4  ;;  %s245_s15 = int_to_ptr.vmem [resolvable:$true] %s244_s15  ;;  %s269_s18 = int_to_ptr.hbm [resolvable:$true] %s268_s18 }
   0xf   : > { %p2069_p3 = pnand %p1258_p0, %p231_p2  ;;  %s1986_s20 = smov [#allocation8]  }
  0x10   : > { %s270_s21 = sshll.u32 %s1986_s20, 4  ;;  %s1987_s22 = smov 192   ;;  %s271_s21 = int_to_ptr.vmem [resolvable:$true] %s270_s21 }
  0x11   : > { %s242_s11 = sshll.u32 %s2264_s1, 4  ;;  %p1633_p4 = pneg %p2069_p3  ;;  %s243_s11 = int_to_ptr.hbm [resolvable:$true] %s242_s11 }
  0x12   : > { %s1988_s23 = smov 12   ;;  %s1989_s24 = smov 64  }
  0x13   : > { %p2081_p6 = pnand %p1633_p4, %p48_p1  ;;  %s1990_s25 = smov 4  }
  0x14   : > { %s2267_s2 = sld [smem:[#allocation20_spill]]  ;;  %s1991_s14 = smov [#allocation7]  }
  0x15   : > { %1636 = dma.hbm_to_vmem [thread:$0]  (!%p2081_p6), %s243_s11, 3072, %s245_s15, [#allocation6], %s1987_s22, %s1987_s22, %s1988_s23  }
  0x16   : > { %1642 = dma.hbm_to_vmem [thread:$0]  (!%p2081_p6), %s269_s18, 3072, %s271_s21, [#allocation9], %s1989_s24, %s1989_s24, %s1990_s25  }
  0x17   : > { %s259_s16 = sshll.u32 %s1991_s14, 4  ;;  %s285_s11 = sshll.u32 %s2258_s5, 4  ;;  %s260_s16 = int_to_ptr.vmem [resolvable:$true] %s259_s16  ;;  %s286_s11 = int_to_ptr.hbm [resolvable:$true] %s285_s11 }
  0x18   : > { %s1992_s15 = smov [#allocation10]   ;;  %s299_s23 = sshll.u32 %s2259_s6, 4  ;;  %s300_s23 = int_to_ptr.hbm [resolvable:$true] %s299_s23 }
  0x19   : > { %s287_s18 = sshll.u32 %s1992_s15, 4  ;;  %s1993_s26 = smov [#allocation11]   ;;  %s288_s18 = int_to_ptr.vmem [resolvable:$true] %s287_s18 }
  0x1a   : > { %s257_s10 = sshll.u32 %s2267_s2, 4  ;;  %s301_s9 = sshll.u32 %s1993_s26, 4  ;;  %s258_s10 = int_to_ptr.hbm [resolvable:$true] %s257_s10  ;;  %s302_s9 = int_to_ptr.vmem [resolvable:$true] %s301_s9 }
  0x1b   : > { %1639 = dma.hbm_to_vmem [thread:$0]  (!%p2081_p6), %s258_s10, 48, %s260_s16, [#allocation6]  }
  0x1c   : > { %1645 = dma.hbm_to_vmem [thread:$0]  (!%p2081_p6), %s286_s11, 1024, %s288_s18, [#allocation9], %s1989_s24, %s1989_s24, %s1990_s25  }
  0x1d   : > { %1648 = dma.hbm_to_vmem [thread:$0]  (!%p2081_p6), %s300_s23, 1024, %s302_s9, [#allocation12], %s1989_s24, %s1989_s24, %s1990_s25  }
  0x1e   : > { %s1257_s10 = sadd.s32 4294967294, %s1983_s30   ;;  %s2106_s14 = sadd.s32 1, %s1983_s30  }
  0x1f   : > { %s34_s16 = sadd.s32 1, %s1979_s29  ;;  %s31_s17 = ssub.s32 %s1983_s30, %s2106_s14 }
  0x20   : > { %p41_p7 = scmp.ne.s32.totalorder %s1979_s29, %s1975_s28  ;;  %p32_p8 = scmp.eq.s32.totalorder %s31_s17, 0 }
  0x21   : > { %p42_p9 = scmp.eq.s32.totalorder %s1983_s30, 0  ;;  %p47_p10 = scmp.ne.s32.totalorder %s1975_s28, %s1971_s27 }
  0x22   : > { %p218_p11 = scmp.eq.s32.totalorder %s2064_s12, 1  ;;  %p224_p0 = scmp.eq.s32.totalorder %s1257_s10, 1 }
  0x23   : > { %s2118_s20 = scalar_select %p32_p8, %s1979_s29, %s34_s16  }
  0x24   : > { %p2122_p12 = por %p48_p1, %p47_p10  ;;  %p2126_p13 = por %p218_p11, %p41_p7 }
  0x25   : > { %p43_p2 = por %p42_p9, %p41_p7  ;;  %s318_s25 = sand.u32 1, %s1979_s29  }
  0x26   : > { %p2131_p4 = por %p224_p0, %p47_p10  ;;  %p1662_p6 = scmp.lt.s32.totalorder %s1983_s30, 2 }
  0x27   : > { %s1265_s15 = sshll.u32 %s318_s25, 2  ;;  %s1266_s18 = sshll.u32 %s1983_s30, 2 }
  0x28   : > { %s326_s23 = scalar_lea.hbm %s2253_s0, %s1266_s18  ;;  %s322_s9 = scalar_lea.vmem [#allocation2], %s1265_s15 }
  0x29   : > { %s328_s26 = sshll.u32 %s326_s23, 4  ;;  %s330_s16 = sshll.u32 %s322_s9, 4  ;;  %s329_s26 = int_to_ptr.hbm [resolvable:$true] %s328_s26  ;;  %s331_s16 = int_to_ptr.vmem [resolvable:$true] %s330_s16 }
  0x2a   : > { %p2140_p8 = pnand %p1662_p6, %p43_p2  ;;  %s319_s17 = scalar_lea.sflag [#allocation3], %s318_s25 }
  0x2b   : > { %s1875_s1 = sshra.s32 %s329_s26, 4  ;;  %s1882_s15 = scalar_lea.hbm %s2253_s0, 8  ;;  %s1876_s1 = int_to_ptr.hbm [resolvable:$true] %s1875_s1 }
  0x2c   : > { %s1877_s2 = scalar_lea.hbm %s1876_s1, 4  ;;  %p1879_p9 = pneg %p2140_p8 }
  0x2d   : > { %p1878_p7 = scmp.ne.s32.totalorder %s1876_s1, %s1877_s2  ;;  %p1883_p0 = scmp.lt.s32.totalorder %s1876_s1, %s2253_s0 }
  0x2e   : > { %p1884_p2 = scmp.lt.s32.totalorder %s1882_s15, %s1877_s2 }
  0x2f   : > { %p1880_p10 = pnand %p1879_p9, %p1878_p7 }
  0x30   : > { %p1885_p6 = por %p1884_p2, %p1883_p0 }
  0x31   : > { %p1881_p11 = pneg %p1880_p10 }
  0x33   : > { %p1886_p5 = pnand %p1885_p6, %p1881_p11 }
  0x35   : > { %1889 = shalt.err (!%p1886_p5)
}
  0x36   : > { %1652 = dma.hbm_to_vmem [thread:$0]  (!%p2140_p8), %s329_s26, 64, %s331_s16, %s319_s17  }
  0x37   : > { %339 = sbr.rel (%p2069_p3) target bundleno = 877 (0x36d), region = 52  ;;  %s2157_s25 = sand.u32 (!%p2069_p3), 1, %s1975_s28  }
  0x38   : > { %s1268_s9 = sshll.u32 (!%p2069_p3), %s2157_s25, 2  ;;  %s342_s18 = scalar_lea.sflag (!%p2069_p3), [#allocation3], %s2157_s25 }
  0x39   : > { %s2163_s1 = scalar_lea.vmem (!%p2069_p3), [#allocation2], %s1268_s9 }
  0x3c   : > { %1950 = dma.done.wait (%p2122_p12), %s342_s18, 64  }
  0x3d   : > { %1952 = vsyncadd (%p2122_p12), %s342_s18, 4294967232 }
  0x3e   : > { %1954 = dma.done.wait (%p48_p1), [#allocation6], 3120  }
  0x3f   : > { %1956 = vsyncadd (%p48_p1), [#allocation6], 4294964176 }
  0x40   : > { %1958 = dma.done.wait (%p48_p1), [#allocation9], 4096  }
  0x41   : > { %1960 = vsyncadd (%p48_p1), [#allocation9], 4294963200 }
  0x42   : > { %1962 = dma.done.wait (%p48_p1), [#allocation12], 1024  }
  0x43   : > { %1964 = vsyncadd (%p48_p1), [#allocation12], 4294966272  ;;  %v1361_v0 = vld [vmem:[#allocation5 + $0xa8] sm:$0xf]  ;;  %v1567_v1 = vld [vmem:[#allocation5 + $0xb0] sm:$0xf0] }
  0x44   : > { %v1349_v2 = vld [vmem:[#allocation5 + $0x90] sm:$0xf]  ;;  %v1362_v3 = vor.u32 %v1567_v1, %v1361_v0  ;;  %v1564_v4 = vld [vmem:[#allocation5 + $0x98] sm:$0xf0]  ;;  %v1337_v6 = vld [vmem:[#allocation5 + $0x78] sm:$0xf] }
  0x45   : > { %v1350_v5 = vor.u32 %v1564_v4, %v1349_v2  ;;  %v1561_v7 = vld [vmem:[#allocation5 + $0x80] sm:$0xf0]  ;;  %v1566_v8 = vld [vmem:[#allocation5 + $0xac] sm:$0xf]  ;;  %v1363_v9 = vld [vmem:[#allocation5 + $0xb4] sm:$0xf0] }
  0x46   : > { %574 = vmatpush.bf16.msra.mxu0 %v1362_v3  ;;  %v1563_v10 = vld [vmem:[#allocation5 + $0x94] sm:$0xf]  ;;  %v1351_v11 = vld [vmem:[#allocation5 + $0x9c] sm:$0xf0]  ;;  %v1338_v12 = vor.u32 %v1561_v7, %v1337_v6  ;;  %v1366_v13 = vor.u32 %v1566_v8, %v1363_v9  ;;  %v1558_v15 = vld [vmem:[#allocation5 + $0x68] sm:$0xf0] }
  0x47   : > { %v1325_v14 = vld [vmem:[#allocation5 + $0x60] sm:$0xf]  ;;  %v1354_v16 = vor.u32 %v1563_v10, %v1351_v11  ;;  %v1560_v17 = vld [vmem:[#allocation5 + $0x7c] sm:$0xf]  ;;  %v1339_v18 = vld [vmem:[#allocation5 + $0x84] sm:$0xf0] }
  0x48   : > { %587 = vmatpush.bf16.msra.mxu1 %v1366_v13  ;;  %v1326_v19 = vor.u32 %v1558_v15, %v1325_v14  ;;  %v1576_v20 = vld [vmem:[#allocation8 + $0x38] sm:$0xff]  ;;  %v1313_v21 = vld [vmem:[#allocation5 + $0x48] sm:$0xf]  ;;  %v1555_v22 = vld [vmem:[#allocation5 + $0x50] sm:$0xf0]  ;;  %v1342_v23 = vor.u32 %v1560_v17, %v1339_v18  ;;  %vm1000_vm9 = vcmask 1043456  }
  0x49   : > { %826 = vmatpush.bf16.msra.mxu3 %v1576_v20  ;;  %v1575_v24 = vld [vmem:[#allocation8 + $0x30] sm:$0xff]  ;;  %v1557_v25 = vld [vmem:[#allocation5 + $0x64] sm:$0xf]  ;;  %v1327_v26 = vld [vmem:[#allocation5 + $0x6c] sm:$0xf0]  ;;  %v1314_v27 = vor.u32 %v1555_v22, %v1313_v21  ;;  %vm996_vm10 = vcmask 64512  }
  0x4a   : > { %575 = vmatpush.bf16.msra.mxu0 %v1350_v5  ;;  %v1301_v28 = vld [vmem:[#allocation5 + $0x30] sm:$0xf]  ;;  %v1552_v29 = vld [vmem:[#allocation5 + $0x38] sm:$0xf0]  ;;  %v1330_v30 = vor.u32 %v1557_v25, %v1327_v26  ;;  %v1554_v32 = vld [vmem:[#allocation5 + $0x4c] sm:$0xf] }
  0x4b   : > { %v1574_v31 = vld [vmem:[#allocation8 + $0x28] sm:$0xff]  ;;  %v1315_v33 = vld [vmem:[#allocation5 + $0x54] sm:$0xf0]  ;;  %v1302_v34 = vor.u32 %v1552_v29, %v1301_v28  ;;  %v1549_v36 = vld [vmem:[#allocation5 + $0x20] sm:$0xf0]  ;;  %s1542_s19 = sshll.u32 %s2064_s12, 2 }
  0x4c   : > { %588 = vmatpush.bf16.msra.mxu1 %v1354_v16  ;;  %v1289_v35 = vld [vmem:[#allocation5 + $0x18] sm:$0xf]  ;;  %v1318_v37 = vor.u32 %v1554_v32, %v1315_v33  ;;  %v1573_v38 = vld [vmem:[#allocation8 + $0x20] sm:$0xff]  ;;  %v1551_v39 = vld [vmem:[#allocation5 + $0x34] sm:$0xf]  ;;  %s1134_s21 = scalar_lea.hbm %s2261_s8, %s1542_s19  ;;  %s403_s15 = scalar_lea.vmem [#allocation13], %s1268_s9 }
  0x4d   : > { %827 = vmatpush.bf16.msra.mxu3 %v1575_v24  ;;  %v1303_v40 = vld [vmem:[#allocation5 + $0x3c] sm:$0xf0]  ;;  %v1290_v41 = vor.u32 %v1549_v36, %v1289_v35  ;;  %v1546_v43 = vld [vmem:[#allocation5 + $0x8] sm:$0xf0]  ;;  %v1548_v46 = vld [vmem:[#allocation5 + $0x1c] sm:$0xf]  ;;  %v615_v24 = vlaneseq }
  0x4e   : > { %576 = vmatpush.bf16.msra.mxu0 %v1338_v12  ;;  %v1277_v42 = vld [vmem:[#allocation5] sm:$0xf]  ;;  %v1306_v44 = vor.u32 %v1551_v39, %v1303_v40  ;;  %v1291_v47 = vld [vmem:[#allocation5 + $0x24] sm:$0xf0]  ;;  %v1571_v51 = vld [vmem:[#allocation8 + $0x10] sm:$0xff]  ;;  %s1136_s22 = sshll.u32 %s403_s15, 4  ;;  %s1137_s22 = int_to_ptr.vmem [resolvable:$true] %s1136_s22 }
  0x4f   : > { %v1572_v45 = vld [vmem:[#allocation8 + $0x18] sm:$0xff]  ;;  %v1278_v48 = vor.u32 %v1546_v43, %v1277_v42  ;;  %v1294_v50 = vor.u32 %v1548_v46, %v1291_v47  ;;  %v1545_v52 = vld [vmem:[#allocation5 + $0x4] sm:$0xf]  ;;  %v1279_v53 = vld [vmem:[#allocation5 + $0xc] sm:$0xf0]  ;;  %v2189_v29 = vshrl.u32 %v615_v24, 7 }
  0x50   : > { %589 = vmatpush.bf16.msra.mxu1 %v1342_v23  ;;  %v1584_v49 = vld [vmem:[#allocation8 + $0x78] sm:$0xff]  ;;  %v1583_v55 = vld [vmem:[#allocation8 + $0x70] sm:$0xff]  ;;  %v1282_v56 = vor.u32 %v1545_v52, %v1279_v53  ;;  %v1582_v58 = vld [vmem:[#allocation8 + $0x68] sm:$0xff]  ;;  %s1138_s23 = sshll.u32 %s1134_s21, 4  ;;  %s1124_s12 = scalar_lea.sflag [#allocation4], %s2157_s25  ;;  %s1139_s23 = int_to_ptr.hbm [resolvable:$true] %s1138_s23 }
  0x51   : > { %828 = vmatpush.bf16.msra.mxu3 %v1574_v31  ;;  %v2182_v54 = vld [vmem:[%s2163_s1] sm:$0xf]  ;;  %v1581_v60 = vld [vmem:[#allocation8 + $0x60] sm:$0xff]  ;;  %v1590_v61 = vld [vmem:[#allocation8 + $0xa8] sm:$0xff]  ;;  %vm618_vm0 = vcmp.ge.s32.totalorder %v2189_v29, 1  ;;  %vm626_vm1 = vcmp.lt.s32.totalorder %v2189_v29, 7 }
  0x52   : > { %577 = vmatpush.bf16.msra.mxu0 %v1326_v19  ;;  %v1592_v57 = vld [vmem:[#allocation8 + $0xb8] sm:$0xff]  ;;  %v1591_v59 = vld [vmem:[#allocation8 + $0xb0] sm:$0xff]  ;;  %v1589_v63 = vld [vmem:[#allocation8 + $0xa0] sm:$0xff]  ;;  %s1919_s18 = sshra.s32 %s1139_s23, 4  ;;  %s1925_s19 = scalar_lea.hbm %s2261_s8, 8  ;;  %s1920_s18 = int_to_ptr.hbm [resolvable:$true] %s1919_s18 }
  0x53   : > { %v1580_v62 = vld [vmem:[#allocation8 + $0x58] sm:$0xff]  ;;  %v1579_v0 = vld [vmem:[#allocation8 + $0x50] sm:$0xff]  ;;  %v1578_v2 = vld [vmem:[#allocation8 + $0x48] sm:$0xff]  ;;  %s1921_s1 = scalar_lea.hbm %s1920_s18, 4  ;;  %p1926_p12 = scmp.lt.s32.totalorder %s1920_s18, %s2261_s8 }
  0x54   : > { %590 = vmatpush.bf16.msra.mxu1 %v1330_v30  ;;  %v1588_v1 = vld [vmem:[#allocation8 + $0x98] sm:$0xff]  ;;  %v1587_v3 = vld [vmem:[#allocation8 + $0x90] sm:$0xff]  ;;  %v1570_v4 = vld [vmem:[#allocation8 + $0x8] sm:$0xff]  ;;  %p1922_p1 = scmp.ne.s32.totalorder %s1920_s18, %s1921_s1  ;;  %p1927_p8 = scmp.lt.s32.totalorder %s1925_s19, %s1921_s1 }
  0x55   : > { %829 = vmatpush.bf16.msra.mxu3 %v1573_v38  ;;  %v1586_v5 = vld [vmem:[#allocation8 + $0x88] sm:$0xff]  ;;  %v1577_v6 = vld [vmem:[#allocation8 + $0x40] sm:$0xff]  ;;  %v1568_v10 = vld [vmem:[#allocation5 + $0xb8] sm:$0xf0] }
  0x56   : > { %578 = vmatpush.bf16.msra.mxu0 %v1314_v27  ;;  %v1569_v7 = vld [vmem:[#allocation8] sm:$0xff]  ;;  %v1369_v9 = vld [vmem:[#allocation5 + $0xb0] sm:$0xf]  ;;  %v1357_v11 = vld [vmem:[#allocation5 + $0x98] sm:$0xf]  ;;  %p1923_p3 = pnand %p1922_p1, %p2126_p13  ;;  %p1928_p7 = por %p1927_p8, %p1926_p12 }
  0x57   : > { %v1585_v8 = vld [vmem:[#allocation8 + $0x80] sm:$0xff]  ;;  %v1370_v12 = vor.u32 %v1568_v10, %v1369_v9  ;;  %v1345_v15 = vld [vmem:[#allocation5 + $0x80] sm:$0xf]  ;;  %v1562_v16 = vld [vmem:[#allocation5 + $0x88] sm:$0xf0] }
  0x58   : > { %591 = vmatpush.bf16.msra.mxu1 %v1318_v37  ;;  %v1565_v13 = vld [vmem:[#allocation5 + $0xa0] sm:$0xf0]  ;;  %v1346_v17 = vor.u32 %v1562_v16, %v1345_v15  ;;  %v1333_v18 = vld [vmem:[#allocation5 + $0x68] sm:$0xf]  ;;  %v1559_v19 = vld [vmem:[#allocation5 + $0x70] sm:$0xf0]  ;;  %p1924_p5 = pneg %p1923_p3 }
  0x59   : > { %830 = vmatpush.bf16.msra.mxu3 %v1572_v45  ;;  %600 = vmatpush.bf16.msra.mxu2 %v1370_v12  ;;  %v1358_v14 = vor.u32 %v1565_v13, %v1357_v11  ;;  %v1334_v20 = vor.u32 %v1559_v19, %v1333_v18  ;;  %v1321_v21 = vld [vmem:[#allocation5 + $0x50] sm:$0xf]  ;;  %v1556_v22 = vld [vmem:[#allocation5 + $0x58] sm:$0xf0]  ;;  %v1309_v25 = vld [vmem:[#allocation5 + $0x38] sm:$0xf] }
  0x5a   : > { %579 = vmatpush.bf16.msra.mxu0 %v1302_v34  ;;  %v1322_v23 = vor.u32 %v1556_v22, %v1321_v21  ;;  %v1553_v26 = vld [vmem:[#allocation5 + $0x40] sm:$0xf0]  ;;  %v2186_v27 = vld [vmem:[#allocation7] sm:$0x7]  ;;  %v1550_v31 = vld [vmem:[#allocation5 + $0x28] sm:$0xf0]  ;;  %p1929_p9 = pnand %p1928_p7, %p1924_p5 }
  0x5b   : > { %v1310_v28 = vor.u32 %v1553_v26, %v1309_v25  ;;  %v1297_v30 = vld [vmem:[#allocation5 + $0x20] sm:$0xf]  ;;  %v440_v32 = vperm.slane %v2186_v27, 0  ;;  %v1285_v36 = vld [vmem:[#allocation5 + $0x8] sm:$0xf]  ;;  %vm1467_vm2 = vmpackc.low %vm618_vm0, %vm618_vm0 }
  0x5c   : > { %592 = vmatpush.bf16.msra.mxu1 %v1306_v44  ;;  %v1298_v33 = vor.u32 %v1550_v31, %v1297_v30  ;;  %v1547_v37 = vld [vmem:[#allocation5 + $0x10] sm:$0xf0]  ;;  %vm1470_vm3 = vmpackc.low %vm626_vm1, %vm626_vm1  ;;  %v1600_v47 = vld [vmem:[#allocation10 + $0x38] sm:$0xff] }
  0x5d   : > { %831 = vmatpush.bf16.msra.mxu3 %v1571_v51  ;;  %601 = vmatpush.bf16.msra.mxu2 %v1358_v14  ;;  %v1596_v51 = vld [vmem:[#allocation10 + $0x18] sm:$0xff]  ;;  %v1595_v53 = vld [vmem:[#allocation10 + $0x10] sm:$0xff] }
  0x5e   : > { %580 = vmatpush.bf16.msra.mxu0 %v1290_v41  ;;  %v1286_v41 = vor.u32 %v1547_v37, %v1285_v36 }
  0x60   : > { %593 = vmatpush.bf16.msra.mxu1 %v1294_v50  ;;  %v1597_v50 = vld [vmem:[#allocation10 + $0x20] sm:$0xff] }
  0x61   : > { %832 = vmatpush.bf16.msra.mxu3 %v1570_v4  ;;  %602 = vmatpush.bf16.msra.mxu2 %v1346_v17 }
  0x62   : > { %581 = vmatpush.bf16.msra.mxu0 %v1278_v48  ;;  %v1599_v48 = vld [vmem:[#allocation10 + $0x30] sm:$0xff] }
  0x64   : > { %594 = vmatpush.bf16.msra.mxu1 %v1282_v56  ;;  %v1594_v56 = vld [vmem:[#allocation10 + $0x8] sm:$0xff] }
  0x65   : > { %582 = vmatmul.bf16.vlgmr.msra.gmra.mxu0 %v2182_v54  ;;  %833 = vmatpush.bf16.msra.mxu3 %v1569_v7 }
  0x66   : > { %839 = vmatpush.bf16.msrb.mxu0 %v1584_v49  ;;  %603 = vmatpush.bf16.msra.mxu2 %v1334_v20  ;;  %v1598_v49 = vld [vmem:[#allocation10 + $0x28] sm:$0xff] }
  0x67   : > { %595 = vmatmul.bf16.vlgmr.msra.gmra.mxu1 %v2182_v54 }
  0x68   : > { %852 = vmatpush.bf16.msrb.mxu1 %v1592_v57 }
  0x6a   : > { %840 = vmatpush.bf16.msrb.mxu0 %v1583_v55  ;;  %604 = vmatpush.bf16.msra.mxu2 %v1322_v23 }
  0x6c   : > { %853 = vmatpush.bf16.msrb.mxu1 %v1591_v59  ;;  %v1593_v59 = vld [vmem:[#allocation10] sm:$0xff] }
  0x6e   : > { %841 = vmatpush.bf16.msrb.mxu0 %v1582_v58  ;;  %605 = vmatpush.bf16.msra.mxu2 %v1310_v28 }
  0x70   : > { %854 = vmatpush.bf16.msrb.mxu1 %v1590_v61 }
  0x72   : > { %842 = vmatpush.bf16.msrb.mxu0 %v1581_v60  ;;  %606 = vmatpush.bf16.msra.mxu2 %v1298_v33 }
  0x74   : > { %855 = vmatpush.bf16.msrb.mxu1 %v1589_v63 }
  0x76   : > { %843 = vmatpush.bf16.msrb.mxu0 %v1580_v62  ;;  %607 = vmatpush.bf16.msra.mxu2 %v1286_v41  ;;  %v441_v41 = vperm.slane %v2186_v27, 1 }
  0x78   : > { %856 = vmatpush.bf16.msrb.mxu1 %v1588_v1 }
  0x79   : > { %608 = vmatmul.bf16.vlgmr.msra.gmra.mxu2 %v2182_v54  ;;  %v1711_v54 = vld [vmem:[%s2257_s4] ss:$0 sm:$0xff] }
  0x7a   : > { %844 = vmatpush.bf16.msrb.mxu0 %v1579_v0  ;;  %950 = vmatpush.bf16.msrb.mxu2 %v1600_v47 }
  0x7c   : > { %857 = vmatpush.bf16.msrb.mxu1 %v1587_v3 }
  0x7e   : > { %845 = vmatpush.bf16.msrb.mxu0 %v1578_v2  ;;  %951 = vmatpush.bf16.msrb.mxu2 %v1599_v48  ;;  %v990_v48 = vand.u32 127, %v615_v24  ;;  %v1606_v24 = vld [vmem:[#allocation11 + $0x28] sm:$0xff] }
  0x80   : > { %858 = vmatpush.bf16.msrb.mxu1 %v1586_v5  ;;  %vm991_vm8 = vcmp.ge.s32.totalorder %v2189_v29, %v990_v48  ;;  %v1603_v29 = vld [vmem:[#allocation11 + $0x10] sm:$0xff] }
  0x82   : > { %846 = vmatpush.bf16.msrb.mxu0 %v1577_v6  ;;  %952 = vmatpush.bf16.msrb.mxu2 %v1598_v49 }
  0x84   : > { %859 = vmatpush.bf16.msrb.mxu1 %v1585_v8 }
  0x86   : > { %953 = vmatpush.bf16.msrb.mxu2 %v1597_v50 }
  0x8a   : > { %954 = vmatpush.bf16.msrb.mxu2 %v1596_v51 }
  0x8e   : > { %955 = vmatpush.bf16.msrb.mxu2 %v1595_v53 }
  0x92   : > { %956 = vmatpush.bf16.msrb.mxu2 %v1594_v56  ;;  %v1994_v56 = vmov 0.0  }
  0x96   : > { %957 = vmatpush.bf16.msrb.mxu2 %v1593_v59 }
  0xe2   : > { %v583_v34 = vpop.f32.mrf.mxu0 }
  0xe3   : > { %v2193_v35 = vadd.f32 %v583_v34, %v440_v32 }
  0xe4   : > { %v2200_v44 = vpop.f32.mrf.mxu1 }
  0xe5   : > { %v623_v38 = vpack.c.bf16 %v2193_v35, %v2193_v35  ;;  %v617_v39 = vrot.slane %v2193_v35, 7  ;;  %v624_v40 = vrot.slane %v2193_v35, 1 }
  0xe7   : > { %847 = vmatmul.bf16.vlgmr.msrb.gmra.mxu0 %v623_v38  ;;  %v1468_v42 = vpack.c.bf16 %v617_v39, %v617_v39  ;;  %v1471_v43 = vpack.c.bf16 %v624_v40, %v624_v40 }
  0xe9   : > { %1469 = vmatmul.msk.bf16.vlgmr.msra.gmra.mxu3 %vm1467_vm2, %v1468_v42  ;;  %1472 = vmatmul.msk.bf16.vlgmr.msrb.gmra.mxu1 %vm1470_vm3, %v1471_v43 }
  0xea   : > { %v585_v45 = vpop.f32.mrf.mxu0 }
  0xeb   : > { %v597_v45 = vadd.f32 %v2200_v44, %v441_v41  ;;  %v1607_v44 = vld [vmem:[#allocation11 + $0x30] sm:$0xff] }
  0xec   : > { %v598_v46 = vpop.f32.mrf.mxu1 }
  0xed   : > { %v613_v49 = vpack.c.bf16 %v597_v45, %v597_v45 }
  0xfc   : > { %v2206_v1 = vpop.f32.mrf.mxu2 }
 0x104   : > { %v611_v4 = vpop.f32.mrf.mxu2 }
 0x164   : > { %v848_v52 = vpop.f32.mrf.mxu0 }
 0x166   : > { %v861_v55 = vpop.f32.mrf.mxu1 }
 0x16c   : > { %v835_v57 = vpop.f32.mrf.mxu3  ;;  %v850_v58 = vpop.f32.mrf.mxu0 }
 0x16d   : > { %v836_v60 = vadd.f32 %v1711_v54, %v835_v57  ;;  %v1506_v54 = vsel %vm991_vm8, 1.0, %v1994_v56 }
 0x16e   : > { %v863_v61 = vpop.f32.mrf.mxu1  ;;  %v994_v59 = vpack.c.bf16 %v1506_v54, %v1506_v54 }
 0x16f   : > { %v849_v62 = vadd.f32 %v848_v52, %v836_v60  ;;  %v987_v52 = vunpack.c.l.bf16 %v613_v49  ;;  %v1605_v60 = vld [vmem:[#allocation11 + $0x20] sm:$0xff]  ;;  %v1604_v61 = vld [vmem:[#allocation11 + $0x18] sm:$0xff] }
 0x171   : > { %v862_v63 = vadd.f32 %v861_v55, %v849_v62  ;;  %v1602_v62 = vld [vmem:[#allocation11 + $0x8] sm:$0xff] }
 0x173   : > { %v1473_v0 = vmul.f32 -1.442695, %v862_v63 }
 0x174   : > { %v837_v2 = vpop.f32.mrf.mxu3 }
 0x175   : > { %1713 = vpow2.f32 %v1473_v0 }
 0x17b   : > { %v1714_v3 = vpop.eup %1713 }
 0x17c   : > { %v868_v5 = vadd.f32 1.0, %v1714_v3 }
 0x17e   : > { %1715 = vrcp.f32 %v868_v5  ;;  %v880_v9 = vand.u32 2147483648, %v868_v5  ;;  %v878_v11 = vand.u32 2147483647, %v868_v5  ;;  %vm874_vm5 = vweird.f32 %v868_v5 }
 0x180   : > { %v881_v13 = vor.u32 1.1754944e-38, %v880_v9  ;;  %vm879_vm7 = vcmp.eq.f32.partialorder %v878_v11, 8.507059e+37 }
 0x184   : > { %v1716_v6 = vpop.eup %1715 }
 0x185   : > { %v870_v7 = vmul.f32 %v1716_v6, %v868_v5  ;;  %vm875_vm4 = vweird.f32 %v1716_v6 }
 0x186   : > { %vm876_vm6 = vmor %vm874_vm5, %vm875_vm4 }
 0x187   : > { %v871_v8 = vsub.f32 1.0, %v870_v7  ;;  %v1601_v7 = vld [vmem:[#allocation11] sm:$0xff] }
 0x189   : > { %v872_v10 = vmul.f32 %v1716_v6, %v871_v8 }
 0x18b   : > { %v873_v12 = vadd.f32 %v1716_v6, %v872_v10 }
 0x18d   : > { %v877_v14 = vsel %vm876_vm6, %v1716_v6, %v873_v12 }
 0x18e   : > { %v882_v15 = vsel %vm879_vm7, %v881_v13, %v877_v14 }
 0x18f   : > { %v884_v16 = vmul.f32 %v882_v15, %v862_v63  ;;  %v442_v63 = vperm.slane %v2186_v27, 2 }
 0x191   : > { %v885_v17 = vpack.c.bf16 %v884_v16, %v884_v16  ;;  %v610_v0 = vadd.f32 %v2206_v1, %v442_v63 }
 0x193   : > { %958 = vmatmul.bf16.vlgmr.msrb.gmra.mxu2 %v885_v17  ;;  %v614_v2 = vpack.c.bf16 %v610_v0, %v610_v0 }
 0x195   : > { %v1017_v3 = vunpack.c.l.bf16 %v614_v2 }
 0x197   : > { %v1508_v4 = vmul.f32 -1.442695, %v1017_v3 }
 0x216   : > { %v959_v18 = vpop.f32.mrf.mxu2 }
 0x217   : > { %v963_v19 = vrot.slane %v959_v18, 4 }
 0x219   : > { %v964_v20 = vmax.f32 %v959_v18, %v963_v19 }
 0x21b   : > { %v965_v21 = vrot.slane %v964_v20, 2 }
 0x21d   : > { %v966_v22 = vmax.f32 %v964_v20, %v965_v21  ;;  %v1712_v21 = vld [vmem:[%s2260_s7] ss:$0 sm:$0xff] }
 0x21e   : > { %v961_v23 = vpop.f32.mrf.mxu2 }
 0x21f   : > { %v967_v25 = vrot.slane %v966_v22, 1 }
 0x221   : > { %v968_v26 = vmax.f32 %v966_v22, %v967_v25 }
 0x223   : > { %v969_v28 = vsub.f32 %v959_v18, %v968_v26 }
 0x225   : > { %v970_v30 = vmul.f32 1.442695, %v969_v28 }
 0x227   : > { %1717 = vpow2.f32 %v970_v30 }
 0x22d   : > { %v1718_v31 = vpop.eup %1717 }
 0x22e   : > { %v972_v32 = vrot.slane %v1718_v31, 4 }
 0x230   : > { %v973_v33 = vadd.f32 %v1718_v31, %v972_v32 }
 0x232   : > { %v974_v34 = vrot.slane %v973_v33, 2 }
 0x234   : > { %v975_v36 = vadd.f32 %v974_v34, %v973_v33 }
 0x236   : > { %v976_v37 = vrot.slane %v975_v36, 1 }
 0x238   : > { %v977_v38 = vadd.f32 %v976_v37, %v975_v36 }
 0x23a   : > { %1719 = vrcp.f32 %v977_v38 }
 0x23b   : > { %1721 = vpow2.f32 %v1508_v4 }
 0x240   : > { %v1720_v39 = vpop.eup %1719 }
 0x241   : > { %v979_v40 = vmul.f32 %v1720_v39, %v1718_v31  ;;  %v1722_v5 = vpop.eup %1721 }
 0x242   : > { %v1021_v6 = vadd.f32 1.0, %v1722_v5 }
 0x243   : > { %v980_v42 = vmul.f32 %v979_v40, %v2193_v35  ;;  %v1608_v35 = vld [vmem:[#allocation11 + $0x38] sm:$0xff] }
 0x244   : > { %1723 = vrcp.f32 %v1021_v6  ;;  %vm1027_vm11 = vweird.f32 %v1021_v6  ;;  %v1033_v12 = vand.u32 2147483648, %v1021_v6  ;;  %v1031_v13 = vand.u32 2147483647, %v1021_v6 }
 0x245   : > { %v981_v43 = vrot.slane %v980_v42, 4 }
 0x246   : > { %v1034_v1 = vor.u32 1.1754944e-38, %v1033_v12  ;;  %vm1032_vm14 = vcmp.eq.f32.partialorder %v1031_v13, 8.507059e+37 }
 0x247   : > { %v982_v46 = vadd.f32 %v981_v43, %v980_v42 }
 0x249   : > { %v983_v47 = vrot.slane %v982_v46, 2 }
 0x24a   : > { %v1724_v8 = vpop.eup %1723 }
 0x24b   : > { %v984_v50 = vadd.f32 %v983_v47, %v982_v46  ;;  %v1023_v9 = vmul.f32 %v1724_v8, %v1021_v6  ;;  %vm1028_vm12 = vweird.f32 %v1724_v8 }
 0x24c   : > { %vm1029_vm13 = vmor %vm1027_vm11, %vm1028_vm12 }
 0x24d   : > { %v985_v51 = vrot.slane %v984_v50, 1  ;;  %v1024_v10 = vsub.f32 1.0, %v1023_v9 }
 0x24f   : > { %v986_v53 = vadd.f32 %v985_v51, %v984_v50  ;;  %v1025_v11 = vmul.f32 %v1724_v8, %v1024_v10 }
 0x251   : > { %v988_v55 = vmul.f32 %v987_v52, %v986_v53  ;;  %v1026_v27 = vadd.f32 %v1724_v8, %v1025_v11 }
 0x253   : > { %v995_v57 = vpack.c.bf16 %v988_v55, %v988_v55  ;;  %v1030_v14 = vsel %vm1029_vm13, %v1724_v8, %v1026_v27 }
 0x254   : > { %v1035_v15 = vsel %vm1032_vm14, %v1034_v1, %v1030_v14 }
 0x255   : > { %v1002_v58 = vsel %vm1000_vm9, %v995_v57, 0  ;;  %v1037_v16 = vmul.f32 %v1035_v15, %v1017_v3 }
 0x256   : > { %1011 = vmatpush.bf16.msrb.mxu3 %v1002_v58 }
 0x259   : > { %1507 = vmatmul.msk.bf16.vlgmr.msrb.gmra.mxu3 %vm996_vm10, %v994_v59 }
 0x25a   : > { %1108 = vmatpush.bf16.msra.mxu3 %v1608_v35 }
 0x25e   : > { %1109 = vmatpush.bf16.msra.mxu3 %v1607_v44 }
 0x262   : > { %1110 = vmatpush.bf16.msra.mxu3 %v1606_v24 }
 0x266   : > { %1111 = vmatpush.bf16.msra.mxu3 %v1605_v60 }
 0x26a   : > { %1112 = vmatpush.bf16.msra.mxu3 %v1604_v61 }
 0x26e   : > { %1113 = vmatpush.bf16.msra.mxu3 %v1603_v29 }
 0x272   : > { %1114 = vmatpush.bf16.msra.mxu3 %v1602_v62 }
 0x276   : > { %1115 = vmatpush.bf16.msra.mxu3 %v1601_v7 }
 0x2dc   : > { %v1013_v17 = vpop.f32.mrf.mxu3 }
 0x2dd   : > { %v1038_v18 = vmul.f32 %v1037_v16, %v1013_v17 }
 0x2df   : > { %v1039_v19 = vpack.c.bf16 %v1038_v18, %v1038_v18 }
 0x2e1   : > { %1116 = vmatmul.bf16.vlgmr.msra.gmra.mxu3 %v1039_v19 }
 0x2e4   : > { %v1015_v20 = vpop.f32.mrf.mxu3 }
 0x364   : > { %v1117_v22 = vpop.f32.mrf.mxu3 }
 0x365   : > { %v1118_v23 = vadd.f32 %v1712_v21, %v1117_v22 }
 0x367   : > { %v1121_v25 = vpack.c.bf16 %v1118_v23, %v1118_v23 }
 0x369   : > { %1122 = vst [vmem:[%s403_s15] sm:$0xf] %v1121_v25 }
 0x36a   : > { %1932 = shalt.err (!%p1929_p9)
}
 0x36b   : > { %1631 = dma.vmem_to_hbm [thread:$0]  (%p2126_p13), %s1137_s22, 64, %s1139_s23, %s1124_s12  }
 0x36c   : > { %v1119_v26 = vpop.f32.mrf.mxu3 }
 0x36d PF: > { %s1150_s25 = sand.u32 1, %s1971_s27   ;;  %p2272_p10 = scmp.ge.s32.totalorder %s1983_s30, 2 }
 0x36e   : > { %s1151_s16 = scalar_lea.sflag [#allocation4], %s1150_s25 }
 0x36f   : > { %p1654_p11 = pnand %p2272_p10, %p2131_p4 }
 0x371   : > { %p1655_p0 = pneg %p1654_p11 }
 0x373   : > { %1966 = dma.done.wait (%p1655_p0), %s1151_s16, 64  }
 0x374   : > { %1968 = vsyncadd (%p1655_p0), %s1151_s16, 4294967232  ;;  %p24_p2 = scmp.ge.s32.totalorder %s2106_s14, 4   ;;  %s2273_s27 = smov %s1975_s28 }
 0x375   : > { %s2274_s28 = smov %s1979_s29  ;;  %s2275_s29 = smov %s2118_s20 }
 0x376   : > { %s2276_s30 = smov %s2106_s14  ;;  %26 = sbr.rel (!%p24_p2) target bundleno = 11 (0xb), region = 117 }
 0x37b   :  { %1157 = vsyncpa [#allocation3], 1 }
 0x37c   :  { %1159 = vsyncpa [#allocation3 + $0x1], 1 }
 0x37d   :  { %1160 = vsyncpa [#allocation6], 1 }
 0x37e   :  { %1161 = vsyncpa [#allocation9], 1 }
 0x37f   :  { %1162 = vsyncpa [#allocation12], 1 }
 0x380   :  { %1163 = vsyncpa [#allocation4], 1 }
 0x381   :  { %1165 = vsyncpa [#allocation4 + $0x1], 1 }

</bundles_post_ra>
